<compile_context>
chip_gen: v7x
topology: tpu7x:2x2x1
jax: 0.10.0
libtpu: 0.0.40
codegen_flags: <defaults>
</compile_context>

<pallas_src>
import functools

import jax
import jax.numpy as jnp
from jax.experimental import pallas as pl
from jax.experimental.pallas import tpu as pltpu


# Inputs smaller than this skip the Pallas call entirely: custom-call launch +
# pipeline prologue (several us) dwarfs a sub-MiB copy at HBM bandwidth.
_SMALL_BYPASS_BYTES = 2 * 1024 * 1024

# Largest lane width we flatten to (a big multiple of 128 keeps stores as full
# unmasked vst, the biggest measured single lever for copy-class kernels).
_MAX_LANE = 8192


def _identity_kernel(x_ref, o_ref):
    # Pure pass-through on the current tile.
    o_ref[...] = x_ref[...]


def _sublane_multiple(itemsize: int) -> int:
    # Row-tile granularity that satisfies TPU sublane tiling for the dtype.
    return {4: 8, 2: 16, 1: 32}.get(itemsize, 8)


@functools.lru_cache(maxsize=None)
def _budgets():
    """(target_tile_bytes, vmem_limit_bytes), generation-aware."""
    try:
        vmem = int(pltpu.get_tpu_info().vmem_capacity_bytes)
    except Exception:  # pragma: no cover - info query unavailable
        vmem = 64 * 1024 * 1024  # be conservative: assume v7x-sized VMEM
    # 8 MiB tiles -> 2 arrays x 2 double-buffers x 8 MiB = 32 MiB live VMEM.
    tile_bytes = 8 * 1024 * 1024
    if vmem >= 96 * 1024 * 1024:
        # v5e / v6e: 128 MiB physical VMEM.
        vmem_limit = 64 * 1024 * 1024
    else:
        # v7x: 64 MiB physical VMEM.
        vmem_limit = 48 * 1024 * 1024
    return tile_bytes, vmem_limit


def _pick_lane(n: int) -> int:
    """Largest lane width <= _MAX_LANE that is a multiple of 128 and divides n."""
    m = n // 128
    for k in range(min(m, _MAX_LANE // 128), 0, -1):
        if m % k == 0:
            return 128 * k
    return 128


def _identity_copy_pallas(x: jax.Array) -> jax.Array:
    """Materialized identity copy via Pallas into a fresh (un-aliased) buffer."""
    orig_shape = x.shape
    n = x.size
    itemsize = x.dtype.itemsize
    tile_bytes, vmem_limit = _budgets()

    if n % 128 == 0:
        # Lane-dense flattening: (rows, lane) with lane a multiple of 128.
        lane = _pick_lane(n)
        x2 = x.reshape(-1, lane)
        rows = x2.shape[0]
        sub = _sublane_multiple(itemsize)
        row_bytes = lane * itemsize
        max_rows = max(sub, (tile_bytes // row_bytes) // sub * sub)
        if rows <= max_rows:
            tile_rows, grid = rows, (1,)          # full extent: always legal
        else:
            tile_rows, grid = max_rows, (pl.cdiv(rows, max_rows),)
        block = (tile_rows, lane)
        index_map = lambda i: (i, 0)
    else:
        # Not 128-divisible: flatten to a single lane-major row and tile along
        # the lane axis with a capped, 128-multiple tile.  Only the final
        # ragged block lowers to masked stores; all others are full-rate vst.
        x2 = x.reshape(1, n)
        max_lane = max(128, (tile_bytes // itemsize) // 128 * 128)
        if n <= max_lane:
            tile_lane, grid = n, (1,)             # full extent: always legal
        else:
            tile_lane, grid = max_lane, (pl.cdiv(n, max_lane),)
        block = (1, tile_lane)
        index_map = lambda i: (0, i)

    out2 = pl.pallas_call(
        _identity_kernel,
        out_shape=jax.ShapeDtypeStruct(x2.shape, x2.dtype),
        grid_spec=pltpu.PrefetchScalarGridSpec(
            num_scalar_prefetch=0,
            grid=grid,
            in_specs=[pl.BlockSpec(block, index_map)],
            out_specs=pl.BlockSpec(block, index_map),
        ),
        # NOTE: no input_output_aliases -- the whole point of this path is a
        # genuinely independent output buffer (read N + write N, the roofline).
        compiler_params=pltpu.CompilerParams(
            dimension_semantics=("parallel",),  # lets v7x split the tiled axis
            vmem_limit_bytes=vmem_limit,
        ),
    )(x2)

    return out2.reshape(orig_shape)


def identity_map(x: jax.Array, *args, **kwargs) -> jax.Array:
    """IdentityMap.forward: return x unchanged (zero-cost pass-through)."""
    del args, kwargs
    return x


def identity_map_materialized(x: jax.Array, *args, **kwargs) -> jax.Array:
    """Identity that materializes an independent copy for non-trivial inputs."""
    del args, kwargs
    if x.size == 0 or x.size * x.dtype.itemsize < _SMALL_BYPASS_BYTES:
        return x  # small-input bypass: launch overhead >> copy cost
    return _identity_copy_pallas(x)


if __name__ == "__main__":
    key = jax.random.PRNGKey(0)
    # Small shape consistent with a projector input: (batch=2, seq=8, hidden=32).
    x = jax.random.normal(key, (2, 8, 32), dtype=jnp.float32)

    # Fast path: what the module's forward actually does (no data movement).
    y_fast = identity_map(x)
    jax.block_until_ready(y_fast)
    assert y_fast.shape == x.shape and y_fast.dtype == x.dtype
    assert bool(jnp.all(y_fast == x))

    # Materialized-copy entry point (bypasses the kernel for this tiny input).
    y_bypass = identity_map_materialized(x)
    jax.block_until_ready(y_bypass)
    assert bool(jnp.all(y_bypass == x))

    # Exercise the Pallas kernel itself on the small shape to verify it
    # compiles and runs on TPU (lane-dense reshape -> (1, 512) f32 block).
    y_kernel = _identity_copy_pallas(x)
    jax.block_until_ready(y_kernel)
    assert y_kernel.shape == x.shape and y_kernel.dtype == x.dtype
    assert bool(jnp.all(y_kernel == x))

    # Also exercise the non-128-divisible fallback path ((1, n) lane tiling).
    x_odd = jax.random.normal(key, (3, 7, 5), dtype=jnp.float32)
    y_odd = _identity_copy_pallas(x_odd)
    jax.block_until_ready(y_odd)
    assert y_odd.shape == x_odd.shape and bool(jnp.all(y_odd == x_odd))

    print("KERNEL_OK")
</pallas_src>

<mosaic_0001>
module attributes {stable_mosaic.version = 11 : i64} {
  func.func @_identity_kernel(%arg0: i32, %arg1: memref<1x512xf32, #tpu.memory_space<vmem>>, %arg2: memref<1x512xf32, #tpu.memory_space<vmem>>) attributes {dimension_semantics = [#tpu.dimension_semantics<parallel>], iteration_bounds = array<i64: 1>, scalar_prefetch = 0 : i64, scratch_operands = 0 : i64, tpu.core_type = #tpu.core_type<tc>, window_params = [{transform_indices = @transform_0, window_bounds = array<i64: 1, 512>}, {transform_indices = @transform_1, window_bounds = array<i64: 1, 512>}]} {
    %c0 = arith.constant 0 : index
    %c0_0 = arith.constant 0 : index
    %0 = vector.load %arg1[%c0, %c0_0] : memref<1x512xf32, #tpu.memory_space<vmem>>, vector<1x512xf32>
    %c0_1 = arith.constant 0 : index
    %c0_2 = arith.constant 0 : index
    %1 = vector.load %arg2[%c0_1, %c0_2] : memref<1x512xf32, #tpu.memory_space<vmem>>, vector<1x512xf32>
    tpu.vector_store %arg2[%c0_1, %c0_2], %0 {strides = array<i32>} : memref<1x512xf32, #tpu.memory_space<vmem>>, vector<1x512xf32>,
    return
  }
  func.func @transform_0(%arg0: i32) -> (i32, i32) {
    %c0_i32 = arith.constant 0 : i32
    %c0_i32_0 = arith.constant 0 : i32
    return %arg0, %c0_i32 : i32, i32
  }
  func.func @transform_1(%arg0: i32) -> (i32, i32) {
    %c0_i32 = arith.constant 0 : i32
    %c0_i32_0 = arith.constant 0 : i32
    return %arg0, %c0_i32 : i32, i32
  }
}

</mosaic_0001>

<bundles_post_ra>
// kernel: tpu_custom_call.1
= control target key start
LH: loop header
LB: loop body
LE: loop exit
PB: predicated region body
PF: predicated region fallthrough
CT: control target
= control target key end

     0   :  { %6 = vsyncpa [#allocation3], 0  ;;  %s128_s0 = inlined_call_operand.hbm [shape: f32[1,512], index: 0, kind: input, shape index: {}]   ;;  %s129_s1 = inlined_call_operand.hbm [shape: f32[1,512], index: 1, kind: output, shape index: {}]  }
   0x1   :  { %7 = vsyncpa [#allocation4], 0  ;;  %s92_s6 = smov [#allocation2]   ;;  %s44_s10 = scalar_lea.hbm %s128_s0, 64 }
   0x2   :  { %s14_s7 = sshll.u32 %s92_s6, 4  ;;  %p45_p0 = scmp.ne.s32.totalorder %s128_s0, %s44_s10  ;;  %s15_s7 = int_to_ptr.vmem [resolvable:$true] %s14_s7 }
   0x3   :  { %p48_p1 = scmp.lt.u32.totalorder %s44_s10, %s128_s0 }
   0x5   :  { %p50_p2 = pnand %p48_p1, %p45_p0 }
   0x7   :  { %53 = shalt.err (!%p50_p2)
}
   0x8   :  { %s54_s15 = scalar_lea.vmem %s15_s7, 64  ;;  %p59_p4 = scmp.lt.s32.totalorder %s15_s7, %s15_s7 }
   0x9   :  { %p55_p3 = scmp.ne.s32.totalorder %s15_s7, %s54_s15  ;;  %p60_p5 = scmp.lt.s32.totalorder %s54_s15, %s54_s15 }
   0xb   :  { %p61_p6 = por %p60_p5, %p59_p4 }
   0xd   :  { %p62_p7 = pnand %p61_p6, %p55_p3 }
   0xf   :  { %65 = shalt.err (!%p62_p7)
}
  0x10   :  { %17 = dma.hbm_to_vmem [thread:$0]  %s128_s0, 64, %s15_s7, [#allocation3]  }
  0x11   :  { %88 = dma.done.wait [#allocation3], 64  }
  0x12   :  { %89 = vsyncadd [#allocation3], 4294967232  ;;  %v22_v0 = vlaneseq  ;;  %s93_s18 = smov [#allocation5]   ;;  %v21_v1 = vld [vmem:[#allocation2] sm:$0xf] }
  0x13   :  { %s33_s19 = sshll.u32 %s93_s18, 4  ;;  %s34_s19 = int_to_ptr.vmem [resolvable:$true] %s33_s19 }
  0x14   :  { %vm24_vm0 = vcmp.lt.s32.totalorder %v22_v0, 512  ;;  %s66_s20 = scalar_lea.vmem %s34_s19, 64  ;;  %p71_p9 = scmp.lt.s32.totalorder %s34_s19, %s34_s19 }
  0x15   :  { %26 = vst.msk [vmem:[#allocation5] sm:$0xf] %vm24_vm0, %v21_v1  ;;  %p67_p8 = scmp.ne.s32.totalorder %s34_s19, %s66_s20  ;;  %p72_p10 = scmp.lt.s32.totalorder %s66_s20, %s66_s20 }
  0x17   :  { %p73_p11 = por %p72_p10, %p71_p9 }
  0x19   :  { %p74_p12 = pnand %p73_p11, %p67_p8 }
  0x1b   :  { %77 = shalt.err (!%p74_p12)
}
  0x1c   :  { %s78_s0 = scalar_lea.hbm %s129_s1, 64 }
  0x1d   :  { %p79_p13 = scmp.ne.s32.totalorder %s129_s1, %s78_s0  ;;  %p82_p0 = scmp.lt.u32.totalorder %s78_s0, %s129_s1 }
  0x1f   :  { %p84_p1 = pnand %p82_p0, %p79_p13 }
  0x21   :  { %87 = shalt.err (!%p84_p1)
}
  0x22   :  { %36 = dma.vmem_to_hbm [thread:$0]  %s34_s19, 64, %s129_s1, [#allocation4]  }
  0x23   :  { %90 = dma.done.wait [#allocation4], 64  }
  0x24   :  { %91 = vsyncadd [#allocation4], 4294967232 }
  0x25   :  { %40 = vsyncpa [#allocation3], 1 }
  0x26   :  { %41 = vsyncpa [#allocation4], 1 }

</bundles_post_ra>
